<compile_context>
chip_gen: v7x
topology: tpu7x:2x2x1
jax: 0.10.0
libtpu: 0.0.40
codegen_flags: <defaults>
</compile_context>

<pallas_src>
import functools
import math

import jax
import jax.numpy as jnp
from jax import lax
from jax.experimental import pallas as pl
from jax.experimental.pallas import tpu as pltpu

_LANE = 128
_TARGET_BLOCK_ELEMS = 512 * 1024      # ~2 MiB of f32 per input block (double-buffered)
_MAX_LANE_TILE = 2048
_MAX_SUBLANE_TILE = 4096
_VMEM_LIMIT = 32 * 1024 * 1024        # safe on v5e/v6e (128 MiB) and v7x (64 MiB)


def _sublane_align(dtype):
    # sub-32-bit dtypes pack along sublanes: bf16 vreg = (16,128), int8 = (32,128)
    return max(8, 32 // jnp.dtype(dtype).itemsize)


def _pick_dim_tile(n, align, cap):
    """Tile for a dim of extent n: full extent if n <= cap, else the largest
    divisor of n that is a multiple of `align` and <= cap, else an aligned cap
    (the final grid block then overhangs the array -> masked / dropped)."""
    if n <= cap:
        return n
    t = max(align, (cap // align) * align)
    while t >= align:
        if n % t == 0:
            return t
        t -= align
    return max(align, (cap // align) * align)


def _split_for_cores(tile, n, align):
    """If the parallel grid axis would have a single block, halve the tile so
    both v7x TensorCores get work.  No-op when n is too small to split."""
    if pl.cdiv(n, tile) >= 2 or n < 2 * align:
        return tile
    return max(align, ((n // 2) // align) * align)


# ----------------------------------------------------------------------------
# Kernel 1: full reduction  (R, C) -> per-row-block (8, 128) partials
# ----------------------------------------------------------------------------
def _sum_all_kernel(x_ref, o_ref, *, n_rows, n_cols, tr, tc, acc_dtype):
    r = pl.program_id(0)
    c = pl.program_id(1)

    @pl.when(c == 0)
    def _init():
        o_ref[...] = jnp.zeros_like(o_ref)

    xb = x_ref[...].astype(acc_dtype)                        # (tr, tc)
    if n_rows % tr != 0:                                     # ragged reduced rows
        row = lax.broadcasted_iota(jnp.int32, (tr, tc), 0)
        xb = jnp.where(r * tr + row < n_rows, xb, 0)
    if n_cols % tc != 0:                                     # ragged reduced cols
        col = lax.broadcasted_iota(jnp.int32, (tr, tc), 1)
        xb = jnp.where(c * tc + col < n_cols, xb, 0)

    if tr % 8 == 0 and tc % 128 == 0:
        # fold the whole block into the (8, 128) accumulator with VPU adds only
        part = xb.reshape(tr // 8, 8, tc).sum(axis=0)        # (8, tc)
        part = part.reshape(8, tc // 128, 128).sum(axis=1)   # (8, 128)
    else:
        # odd full-extent tiles (small arrays): collapse the block to a scalar
        if tr % 8 == 0 and tr > 8:
            s = jnp.sum(xb.reshape(tr // 8, 8, tc).sum(axis=0))
        else:
            s = jnp.sum(xb)
        ii = lax.broadcasted_iota(jnp.int32, (8, _LANE), 0)
        jj = lax.broadcasted_iota(jnp.int32, (8, _LANE), 1)
        part = jnp.where((ii == 0) & (jj == 0), s, jnp.zeros((), acc_dtype))
    o_ref[...] += part


def _sum_all(x, acc_dtype):
    if x.ndim == 0:
        x2 = x.reshape(1, 1)
    elif x.ndim == 1:
        x2 = x.reshape(1, x.shape[0])
    else:
        x2 = x.reshape(-1, x.shape[-1])      # merge leading dims only (layout-cheap)
    R, C = x2.shape
    if R < 8:                                # skinny row dim streams poorly: refold minor axis
        for w in (1024, 512, 256, 128):
            if C % w == 0 and (R * C) // w >= 8:
                x2 = x2.reshape((R * C) // w, w)
                R, C = x2.shape
                break
    sub_align = _sublane_align(x2.dtype)

    lane_cap = _MAX_LANE_TILE if R >= 64 else 16384
    tc = _pick_dim_tile(C, _LANE, lane_cap)
    sub_cap = max(sub_align,
                  (min(_MAX_SUBLANE_TILE, _TARGET_BLOCK_ELEMS // tc) // sub_align) * sub_align)
    tr = _pick_dim_tile(R, sub_align, sub_cap)
    tr = _split_for_cores(tr, R, sub_align)   # both TCs stream HBM on v7x
    nr, nc = pl.cdiv(R, tr), pl.cdiv(C, tc)

    kernel = functools.partial(_sum_all_kernel, n_rows=R, n_cols=C,
                               tr=tr, tc=tc, acc_dtype=acc_dtype)
    partials = pl.pallas_call(
        kernel,
        grid=(nr, nc),
        in_specs=[pl.BlockSpec((tr, tc), lambda r, c: (r, c))],
        out_specs=pl.BlockSpec((8, _LANE), lambda r, c: (r, 0)),
        out_shape=jax.ShapeDtypeStruct((nr * 8, _LANE), acc_dtype),
        compiler_params=pltpu.CompilerParams(
            dimension_semantics=("parallel", "arbitrary"),
            vmem_limit_bytes=_VMEM_LIMIT),
    )(x2)
    # trivial epilogue: combine the per-row-block / per-core partials (a few KiB)
    return jnp.sum(partials)


# ----------------------------------------------------------------------------
# Kernel 2: reduce the trailing (lane) axis.  x: (P, K) -> (P,)
# Kept dims sit on sublanes, reduced dims on the 128-lane axis (lane-dense DMAs).
# ----------------------------------------------------------------------------
def _sum_trailing_kernel(x_ref, o_ref, *, n_k, tk, acc_dtype):
    k = pl.program_id(1)

    @pl.when(k == 0)
    def _init():
        o_ref[...] = jnp.zeros_like(o_ref)

    xb = x_ref[...].astype(acc_dtype)                        # (tp, tk)
    if n_k % tk != 0:                                        # ragged reduced cols
        col = lax.broadcasted_iota(jnp.int32, xb.shape, 1)
        xb = jnp.where(k * tk + col < n_k, xb, 0)
    tp = xb.shape[0]
    if tk % 128 == 0 and tk > 128:
        xb = xb.reshape(tp, tk // 128, 128).sum(axis=1)      # VPU fold across lane groups
    o_ref[...] += jnp.sum(xb, axis=1, keepdims=True)         # one narrow XLU reduce


def _sum_trailing(x2, acc_dtype):
    P, K = x2.shape
    sub_align = _sublane_align(x2.dtype)
    tk = _pick_dim_tile(K, _LANE, _MAX_LANE_TILE)
    sub_cap = max(sub_align,
                  (min(_MAX_SUBLANE_TILE, _TARGET_BLOCK_ELEMS // tk) // sub_align) * sub_align)
    tp = _pick_dim_tile(P, sub_align, sub_cap)
    tp = _split_for_cores(tp, P, sub_align)
    np_, nk = pl.cdiv(P, tp), pl.cdiv(K, tk)

    kernel = functools.partial(_sum_trailing_kernel, n_k=K, tk=tk, acc_dtype=acc_dtype)
    out = pl.pallas_call(
        kernel,
        grid=(np_, nk),
        in_specs=[pl.BlockSpec((tp, tk), lambda p, k: (p, k))],
        out_specs=pl.BlockSpec((tp, 1), lambda p, k: (p, 0)),
        out_shape=jax.ShapeDtypeStruct((P, 1), acc_dtype),
        compiler_params=pltpu.CompilerParams(
            dimension_semantics=("parallel", "arbitrary"),
            vmem_limit_bytes=_VMEM_LIMIT),
    )(x2)
    return out[:, 0]


# ----------------------------------------------------------------------------
# Kernel 3: reduce a contiguous middle axis.  x: (pre, K, M) -> (pre, M)
# Kept trailing dims stay on the 128-lane axis (no transpose, lane-dense output).
# ----------------------------------------------------------------------------
def _sum_middle_kernel(x_ref, o_ref, *, n_k, tk, acc_dtype):
    k = pl.program_id(2)

    @pl.when(k == 0)
    def _init():
        o_ref[...] = jnp.zeros_like(o_ref)

    xb = x_ref[...].astype(acc_dtype)                        # (1, tk, tm)
    if n_k % tk != 0:                                        # ragged reduced rows
        row = lax.broadcasted_iota(jnp.int32, xb.shape, 1)
        xb = jnp.where(k * tk + row < n_k, xb, 0)
    o_ref[...] += jnp.sum(xb, axis=1, keepdims=True)         # (1, 1, tm)


def _sum_middle(x3, acc_dtype):
    B, K, M = x3.shape
    sub_align = _sublane_align(x3.dtype)
    tm = _pick_dim_tile(M, _LANE, _MAX_LANE_TILE)
    sub_cap = max(sub_align,
                  (min(_MAX_SUBLANE_TILE, _TARGET_BLOCK_ELEMS // tm) // sub_align) * sub_align)
    tk = _pick_dim_tile(K, sub_align, sub_cap)
    nm = pl.cdiv(M, tm)
    if B * nm < 2 and M >= 2 * _LANE:                        # give the 2nd TC work (v7x)
        tm = max(_LANE, ((M // 2) // _LANE) * _LANE)
        nm = pl.cdiv(M, tm)
    nk = pl.cdiv(K, tk)

    kernel = functools.partial(_sum_middle_kernel, n_k=K, tk=tk, acc_dtype=acc_dtype)
    out = pl.pallas_call(
        kernel,
        grid=(B, nm, nk),
        in_specs=[pl.BlockSpec((1, tk, tm), lambda b, m, k: (b, k, m))],
        out_specs=pl.BlockSpec((1, 1, tm), lambda b, m, k: (b, 0, m)),
        out_shape=jax.ShapeDtypeStruct((B, 1, M), acc_dtype),
        compiler_params=pltpu.CompilerParams(
            dimension_semantics=("parallel", "parallel", "arbitrary"),
            vmem_limit_bytes=_VMEM_LIMIT),
    )(x3)
    return out[:, 0, :]


# ----------------------------------------------------------------------------
# Public wrapper mirroring torch.sum(x, *args, **kwargs)
# ----------------------------------------------------------------------------
def pallas_sum(x, dim=None, keepdim=False, dtype=None):
    x = jnp.asarray(x)
    inexact = jnp.issubdtype(x.dtype, jnp.inexact)
    acc_dtype = jnp.float32 if inexact else jnp.int32
    if dtype is not None:
        out_dtype = jnp.dtype(dtype)
    elif inexact:
        out_dtype = x.dtype
    else:
        # TODO(synk): torch.sum promotes integer/bool sums to int64; without x64
        # enabled the result here is int32 (exact only within int32 range).
        out_dtype = jnp.int32

    ndim = x.ndim
    if ndim == 0:
        return x.astype(out_dtype)

    if dim is None:
        red = tuple(range(ndim))
        explicit_dim = False
    else:
        explicit_dim = True
        if isinstance(dim, (tuple, list)):
            red = tuple(sorted(set(int(d) % ndim for d in dim)))
            if not red:
                # TODO(synk): dim=() treated as reduce-all (legacy torch semantics).
                red = tuple(range(ndim))
        else:
            red = (int(dim) % ndim,)

    if x.size == 0:
        if keepdim and explicit_dim:
            shape = tuple(1 if a in red else s for a, s in enumerate(x.shape))
        else:
            shape = tuple(s for a, s in enumerate(x.shape) if a not in red)
        return jnp.zeros(shape, out_dtype)

    # ---- full reduction -----------------------------------------------------
    if len(red) == ndim:
        res = _sum_all(x, acc_dtype)
        if keepdim and explicit_dim:
            res = res.reshape((1,) * ndim)
        return res.astype(out_dtype)

    # ---- partial reduction --------------------------------------------------
    kept = [a for a in range(ndim) if a not in red]
    contiguous = (red[-1] - red[0] + 1) == len(red)
    if contiguous:
        r0, r1 = red[0], red[-1]
        pre = math.prod(x.shape[:r0])
        K = math.prod(x.shape[r0:r1 + 1])
        post = math.prod(x.shape[r1 + 1:])
        kept_shape = list(x.shape[:r0]) + list(x.shape[r1 + 1:])
        if post == 1:
            res = _sum_trailing(x.reshape(pre, K), acc_dtype)       # (pre,)
        else:
            res = _sum_middle(x.reshape(pre, K, post), acc_dtype)   # (pre, post)
    else:
        # TODO(synk): non-contiguous reduced axes cost one transpose pass (rare).
        pre = math.prod([x.shape[a] for a in kept])
        K = math.prod([x.shape[a] for a in red])
        kept_shape = [x.shape[a] for a in kept]
        xt = jnp.transpose(x, kept + list(red))
        res = _sum_trailing(xt.reshape(pre, K), acc_dtype)

    res = res.reshape(kept_shape)
    if keepdim:
        full = list(x.shape)
        for a in red:
            full[a] = 1
        res = res.reshape(full)
    return res.astype(out_dtype)


if __name__ == "__main__":
    key = jax.random.PRNGKey(0)
    k0, k1, k2, k3 = jax.random.split(key, 4)

    # NCHW activation shapes consistent with how Sum is used inside MVNet.
    x = jax.random.normal(k0, (2, 4, 16, 16), jnp.float32)
    x_ragged = jax.random.normal(k1, (3, 700), jnp.float32)    # ragged lane dim
    x_wide = jax.random.normal(k2, (16, 3000), jnp.float32)    # ragged reduction tiles (masked path)
    x_int = jax.random.randint(k3, (2, 4, 16, 16), -50, 50, jnp.int32)

    f_all = jax.jit(pallas_sum)
    f_d1 = jax.jit(lambda v: pallas_sum(v, dim=1))
    f_hw = jax.jit(lambda v: pallas_sum(v, dim=(2, 3), keepdim=True))
    f_r0 = jax.jit(lambda v: pallas_sum(v, dim=0))
    f_last = jax.jit(lambda v: pallas_sum(v, dim=-1))

    s_all = jax.block_until_ready(f_all(x))            # torch.sum(x)
    s_d1 = jax.block_until_ready(f_d1(x))              # torch.sum(x, 1)
    s_hw = jax.block_until_ready(f_hw(x))              # torch.sum(x, (2, 3), keepdim=True)
    s_r0 = jax.block_until_ready(f_r0(x_ragged))       # torch.sum(x, 0)
    s_ra = jax.block_until_ready(f_all(x_ragged))      # torch.sum(x)
    s_w = jax.block_until_ready(f_last(x_wide))        # torch.sum(x, -1)
    s_i = jax.block_until_ready(f_d1(x_int))           # torch.sum(int tensor, 1)

    assert jnp.allclose(s_all, jnp.sum(x), rtol=1e-5, atol=1e-3)
    assert s_d1.shape == (2, 16, 16)
    assert jnp.allclose(s_d1, jnp.sum(x, axis=1), rtol=1e-5, atol=1e-4)
    assert s_hw.shape == (2, 4, 1, 1)
    assert jnp.allclose(s_hw, jnp.sum(x, axis=(2, 3), keepdims=True), rtol=1e-5, atol=1e-4)
    assert s_r0.shape == (700,)
    assert jnp.allclose(s_r0, jnp.sum(x_ragged, axis=0), rtol=1e-5, atol=1e-4)
    assert jnp.allclose(s_ra, jnp.sum(x_ragged), rtol=1e-5, atol=1e-3)
    assert s_w.shape == (16,)
    assert jnp.allclose(s_w, jnp.sum(x_wide, axis=-1), rtol=1e-4, atol=1e-2)
    assert s_i.dtype == jnp.int32 and bool(jnp.all(s_i == jnp.sum(x_int, axis=1)))

    print("KERNEL_OK")
</pallas_src>

<mosaic_0001>
module attributes {stable_mosaic.version = 11 : i64} {
  func.func @_sum_all_kernel(%arg0: i32, %arg1: i32, %arg2: memref<64x16xf32, #tpu.memory_space<vmem>>, %arg3: memref<8x128xf32, #tpu.memory_space<vmem>>) attributes {dimension_semantics = [#tpu.dimension_semantics<parallel>, #tpu.dimension_semantics<arbitrary>], iteration_bounds = array<i64: 2, 1>, scalar_prefetch = 0 : i64, scratch_operands = 0 : i64, tpu.core_type = #tpu.core_type<tc>, window_params = [{transform_indices = @transform_0, window_bounds = array<i64: 64, 16>}, {transform_indices = @transform_1, window_bounds = array<i64: 8, 128>}]} {
    %c0_i32 = arith.constant 0 : i32
    %0 = arith.cmpi eq, %arg1, %c0_i32 : i32
    %1 = arith.extui %0 : i1 to i32
    %c0_i32_0 = arith.constant 0 : i32
    %2 = arith.cmpi ne, %1, %c0_i32_0 : i32
    scf.if %2 {
      %cst_10 = arith.constant 0.000000e+00 : f32
      %23 = vector.broadcast %cst_10 : f32 to vector<8x128xf32>
      %c0_11 = arith.constant 0 : index
      %c0_12 = arith.constant 0 : index
      %24 = vector.load %arg3[%c0_11, %c0_12] : memref<8x128xf32, #tpu.memory_space<vmem>>, vector<8x128xf32>
      tpu.vector_store %arg3[%c0_11, %c0_12], %23 {strides = array<i32>} : memref<8x128xf32, #tpu.memory_space<vmem>>, vector<8x128xf32>,
    } else {
    }
    %c0 = arith.constant 0 : index
    %c0_1 = arith.constant 0 : index
    %3 = vector.load %arg2[%c0, %c0_1] : memref<64x16xf32, #tpu.memory_space<vmem>>, vector<64x16xf32>
    %4 = vector.shape_cast %3 : vector<64x16xf32> to vector<8x8x16xf32>
    %cst = arith.constant dense<0.000000e+00> : vector<8x16xf32>
    %5 = vector.multi_reduction <add>, %4, %cst [0] : vector<8x8x16xf32> to vector<8x16xf32>
    %6 = vector.shape_cast %5 : vector<8x16xf32> to vector<1x8x16xf32>
    %cst_2 = arith.constant dense<0.000000e+00> : vector<1xf32>
    %7 = vector.multi_reduction <add>, %6, %cst_2 [1, 2] : vector<1x8x16xf32> to vector<1xf32>
    %8 = vector.shape_cast %7 : vector<1xf32> to vector<1x1x1xf32>
    %9 = vector.extract %8[0, 0, 0] : f32 from vector<1x1x1xf32>
    %10 = tpu.iota {dimensions = array<i32: 0>} : vector<8x128xi32>
    %11 = tpu.iota {dimensions = array<i32: 1>} : vector<8x128xi32>
    %c0_i32_3 = arith.constant 0 : i32
    %12 = vector.broadcast %c0_i32_3 : i32 to vector<8x128xi32>
    %13 = arith.cmpi eq, %10, %12 : vector<8x128xi32>
    %c0_i32_4 = arith.constant 0 : i32
    %14 = vector.broadcast %c0_i32_4 : i32 to vector<8x128xi32>
    %15 = arith.cmpi eq, %11, %14 : vector<8x128xi32>
    %16 = arith.andi %13, %15 : vector<8x128xi1>
    %cst_5 = arith.constant 0.000000e+00 : f32
    %17 = vector.broadcast %9 : f32 to vector<8x128xf32>
    %18 = vector.broadcast %cst_5 : f32 to vector<8x128xf32>
    %19 = arith.select %16, %17, %18 : vector<8x128xi1>, vector<8x128xf32>
    %c0_6 = arith.constant 0 : index
    %c0_7 = arith.constant 0 : index
    %20 = vector.load %arg3[%c0_6, %c0_7] : memref<8x128xf32, #tpu.memory_space<vmem>>, vector<8x128xf32>
    %21 = arith.addf %20, %19 : vector<8x128xf32>
    %c0_8 = arith.constant 0 : index
    %c0_9 = arith.constant 0 : index
    %22 = vector.load %arg3[%c0_8, %c0_9] : memref<8x128xf32, #tpu.memory_space<vmem>>, vector<8x128xf32>
    tpu.vector_store %arg3[%c0_8, %c0_9], %21 {strides = array<i32>} : memref<8x128xf32, #tpu.memory_space<vmem>>, vector<8x128xf32>,
    return
  }
  func.func @transform_0(%arg0: i32, %arg1: i32) -> (i32, i32) {
    %c0_i32 = arith.constant 0 : i32
    return %arg0, %arg1 : i32, i32
  }
  func.func @transform_1(%arg0: i32, %arg1: i32) -> (i32, i32) {
    %c0_i32 = arith.constant 0 : i32
    %c0_i32_0 = arith.constant 0 : i32
    return %arg0, %c0_i32 : i32, i32
  }
}

</mosaic_0001>

<bundles_post_ra>
// kernel: pallas_sum.1
= control target key start
LH: loop header
LB: loop body
LE: loop exit
PB: predicated region body
PF: predicated region fallthrough
CT: control target
= control target key end

     0   :  { %6 = vsyncpa [#allocation3], 0  ;;  %s578_s0 = inlined_call_operand.hbm [shape: f32[128,16], index: 0, kind: input, shape index: {}]   ;;  %s579_s1 = inlined_call_operand.vmem [shape: f32[16,128], index: 1, kind: output, shape index: {}]  }
   0x1   :  { %8 = vsyncpa [#allocation3 + $0x1], 0  ;;  %s445_s6 = smov 0   ;;  %s447_s7 = smov 0  }
   0x2   :  { %s449_s8 = smov 0   ;;  %s451_s9 = smov 0  }
   0x3   :  { %s453_s10 = smov 0   ;;  %s455_s11 = smov 0  }
   0x4 LB: > { %s277_s12 = sadd.s32 4294967295, %s430_s11   ;;  %s26_s13 = sadd.s32 1, %s426_s10  ;;  %s430_s11 = sphi %s455_s11, %s14_s11   ;;  %s426_s10 = sphi %s453_s10, %s587_s10   ;;  %s422_s9 = sphi %s451_s9, %s586_s9   ;;  %s418_s8 = sphi %s449_s8, %s585_s8   ;;  %s414_s7 = sphi %s447_s7, %s584_s7   ;;  %s410_s6 = sphi %s445_s6, %s583_s6  }
   0x5   : > { %p28_p0 = scmp.ge.s32.totalorder %s26_s13, 2  ;;  %s35_s14 = sadd.s32 1, %s418_s8 }
   0x6   : > { %p42_p1 = scmp.ne.s32.totalorder %s418_s8, %s414_s7  ;;  %p43_p2 = scmp.eq.s32.totalorder %s430_s11, 0 }
   0x7   : > { %s589_s13 = smov (%p28_p0, %s26_s13), 0  ;;  %p48_p4 = scmp.ne.s32.totalorder %s414_s7, %s410_s6 }
   0x8   : > { %p481_p3 = por %p43_p2, %p42_p1  ;;  %s30_s16 = ssub.s32 %s426_s10, %s589_s13 }
   0x9   : > { %p49_p5 = scmp.eq.s32.totalorder %s277_s12, 0  ;;  %p33_p6 = scmp.eq.s32.totalorder %s30_s16, 0 }
   0xa   : > { %p298_p8 = scmp.lt.s32.totalorder %s430_s11, 2  ;;  %s98_s19 = sand.u32 1, %s418_s8  }
   0xb   : > { %p488_p7 = por %p49_p5, %p48_p4  ;;  %s289_s20 = sshll.u32 %s426_s10, 10 }
   0xc   : > { %s494_s18 = scalar_select %p33_p6, %s418_s8, %s35_s14  }
   0xd   : > { %s281_s21 = sshll.u32 %s98_s19, 6  ;;  %s501_s24 = scalar_lea.hbm %s578_s0, %s289_s20 }
   0xe   : > { %s102_s25 = scalar_lea.vmem [#allocation2], %s281_s21  ;;  %p505_p9 = pnand %p298_p8, %p481_p3 }
   0xf   : > { %s110_s26 = sshll.u32 %s102_s25, 4  ;;  %s511_s28 = scalar_lea.sflag [#allocation3], %s98_s19  ;;  %s509_s26 = int_to_ptr.vmem [resolvable:$true] %s110_s26 }
  0x10   : > { %s350_s29 = scalar_lea.hbm %s501_s24, 1024  ;;  %p352_p11 = pneg %p505_p9 }
  0x11   : > { %p351_p10 = scmp.ne.s32.totalorder %s501_s24, %s350_s29  ;;  %s355_s3 = scalar_lea.hbm %s578_s0, 2048 }
  0x12   : > { %p356_p0 = scmp.lt.u32.totalorder %s501_s24, %s578_s0  ;;  %p357_p1 = scmp.lt.u32.totalorder %s355_s3, %s350_s29 }
  0x13   : > { %p353_p12 = pnand %p352_p11, %p351_p10  ;;  %p359_p3 = scmp.lt.u32.totalorder %s350_s29, %s501_s24 }
  0x14   : > { %p358_p2 = por %p357_p1, %p356_p0 }
  0x15   : > { %p354_p13 = pneg %p353_p12 }
  0x16   : > { %p360_p4 = por %p359_p3, %p358_p2 }
  0x18   : > { %p361_p5 = pnand %p360_p4, %p354_p13 }
  0x1a   : > { %364 = shalt.err (!%p361_p5)
}
  0x1b   : > { %s365_s6 = scalar_lea.vmem %s509_s26, 1024  ;;  %s432_s12 = smov [#allocation2]  }
  0x1c   : > { %p366_p6 = scmp.ne.s32.totalorder %s509_s26, %s365_s6  ;;  %s370_s14 = sshll.u32 %s432_s12, 4  ;;  %s371_s14 = int_to_ptr.vmem [resolvable:$false] %s370_s14 }
  0x1d   : > { %s372_s15 = scalar_lea.vmem %s371_s14, 2048  ;;  %p373_p12 = scmp.lt.s32.totalorder %s509_s26, %s371_s14 }
  0x1e   : > { %p368_p8 = pnand %p366_p6, %p352_p11  ;;  %p374_p0 = scmp.lt.s32.totalorder %s372_s15, %s365_s6 }
  0x20   : > { %p369_p10 = pneg %p368_p8  ;;  %p375_p1 = por %p374_p0, %p373_p12 }
  0x22   : > { %p376_p2 = pnand %p375_p1, %p369_p10 }
  0x24   : > { %379 = shalt.err (!%p376_p2)
}
  0x25   : > { %s433_s16 = smov 128   ;;  %s434_s19 = smov 8  }
  0x26   : > { %297 = dma.hbm_to_vmem [thread:$0]  (!%p505_p9), %s501_s24, 1024, %s509_s26, %s511_s28, %s433_s16, %s433_s16, %s434_s19  }
  0x27   : > { %p284_p11 = scmp.ge.s32.totalorder %s430_s11, 1  ;;  %p118_p13 = scmp.lt.s32.totalorder %s430_s11, 3 }
  0x29   : > { %p119_p3 = pnand %p284_p11, %p118_p13 }
  0x2a   : > { %s124_s20 = sand.u32 (!%p119_p3), 1, %s414_s7  }
  0x2b   : > { %122 = sbr.rel (%p119_p3) target bundleno = 275 (0x113), region = 24  ;;  %s285_s21 = sshll.u32 (!%p119_p3), %s124_s20, 6 }
  0x2c   : > { %s125_s22 = scalar_lea.sflag (!%p119_p3), [#allocation3], %s124_s20  ;;  %s128_s23 = scalar_lea.vmem (!%p119_p3), [#allocation2], %s285_s21 }
  0x32   : > { %405 = dma.done.wait (%p488_p7), %s125_s22, 1024  }
  0x33   : > { %407 = vsyncadd (%p488_p7), %s125_s22, 4294966272  ;;  %vm164_vm0 = vcmask 130048   ;;  %v156_v0 = vld [vmem:[%s128_s23] sm:$0xff]  ;;  %v157_v1 = vld [vmem:[%s128_s23 + $0x8] sm:$0xff]  ;;  %v190_v31 = vlaneseq  ;;  %p147_p7 = scmp.lt.s32.totalorder %s422_s9, 1 }
  0x34   : > { %v158_v2 = vld [vmem:[%s128_s23 + $0x10] sm:$0xff]  ;;  %v159_v3 = vld [vmem:[%s128_s23 + $0x18] sm:$0xff]  ;;  %v165_v4 = vsel %vm164_vm0, %v156_v0, 0.0  ;;  %v166_v5 = vsel %vm164_vm0, %v157_v1, 0.0  ;;  %v160_v7 = vld [vmem:[%s128_s23 + $0x20] sm:$0xff] }
  0x35   : > { %v168_v6 = vsel %vm164_vm0, %v158_v2, 0.0  ;;  %v167_v8 = vadd.f32 %v166_v5, %v165_v4  ;;  %v170_v9 = vsel %vm164_vm0, %v159_v3, 0.0  ;;  %v161_v10 = vld [vmem:[%s128_s23 + $0x28] sm:$0xff]  ;;  %v172_v12 = vsel %vm164_vm0, %v160_v7, 0.0  ;;  %v162_v13 = vld [vmem:[%s128_s23 + $0x30] sm:$0xff]  ;;  %v163_v16 = vld [vmem:[%s128_s23 + $0x38] sm:$0xff] }
  0x36   : > { %v174_v15 = vsel %vm164_vm0, %v161_v10, 0.0  ;;  %v176_v18 = vsel %vm164_vm0, %v162_v13, 0.0  ;;  %v178_v20 = vsel %vm164_vm0, %v163_v16, 0.0  ;;  %v191_v32 = vshrl.u32 %v190_v31, 7  ;;  %s591_s9 = smov (!%p147_p7, %s422_s9), 1 }
  0x37   : > { %v169_v11 = vadd.f32 %v168_v6, %v167_v8  ;;  %v193_v33 = vand.u32 127, %v190_v31  ;;  %s286_s17 = sshll.u32 %s591_s9, 3 }
  0x38   : > { %vm194_vm1 = vcmp.eq.s32.totalorder %v191_v32, 0  ;;  %s150_s27 = scalar_lea.vmem %s579_s1, %s286_s17 }
  0x39   : > { %v171_v14 = vadd.f32 %v170_v9, %v169_v11  ;;  %vm195_vm2 = vcmp.eq.s32.totalorder %v193_v33, 0 }
  0x3a   : > { %vm196_vm3 = vmand %vm194_vm1, %vm195_vm2 }
  0x3b   : > { %v173_v17 = vadd.f32 %v172_v12, %v171_v14 }
  0x3d   : > { %v175_v19 = vadd.f32 %v174_v15, %v173_v17 }
  0x3f   : > { %v177_v21 = vadd.f32 %v176_v18, %v175_v19 }
  0x41   : > { %v179_v22 = vadd.f32 %v178_v20, %v177_v21 }
  0x43   : > { %v180_v23 = vsel %vm164_vm0, %v179_v22, 0.0 }
  0x44   : > { %181 = vadd.xlane.f32.xlu0 %v180_v23 }
  0xd1   : > { %v182_v24 = vpop.xlane.xlu0 %181 }
  0xd2   : > { %v183_v25 = vrot.slane %v182_v24, 4 }
  0xd4   : > { %v184_v26 = vadd.f32 %v183_v25, %v182_v24 }
  0xd6   : > { %v185_v27 = vrot.slane %v184_v26, 2 }
  0xd8   : > { %v186_v28 = vadd.f32 %v185_v27, %v184_v26 }
  0xda   : > { %v187_v29 = vrot.slane %v186_v28, 1 }
  0xdc   : > { %v188_v30 = vadd.f32 %v187_v29, %v186_v28 }
  0xde   : > { %290 = vpush %v188_v30 }
 0x10f   : > { %s291_s24 = spop %290 }
 0x110   : > { %v197_v34 = vstv %s291_s24 }
 0x111   : > { %v198_v35 = vsel %vm196_vm3, %v197_v34, 0.0 }
 0x112   : > { %201 = vst [vmem:[%s150_s27] sm:$0xff] %v198_v35 }
 0x113 PF: > { %s14_s11 = sadd.s32 1, %s430_s11   ;;  %s583_s6 = smov %s414_s7 }
 0x114   : > { %p11_p9 = scmp.ge.s32.totalorder %s14_s11, 4   ;;  %s584_s7 = smov %s418_s8 }
 0x115   : > { %s585_s8 = smov %s494_s18  ;;  %s586_s9 = smov %s426_s10 }
 0x116   : > { %s587_s10 = smov %s589_s13  ;;  %13 = sbr.rel (!%p11_p9) target bundleno = 4 (0x4), region = 68 }
 0x11d   :  { %221 = vsyncpa [#allocation3], 1 }
 0x11e   :  { %223 = vsyncpa [#allocation3 + $0x1], 1 }

</bundles_post_ra>
